<compile_context>
chip_gen: v7x
topology: tpu7x:2x2x1
jax: 0.10.0
libtpu: 0.0.40
codegen_flags: <defaults>
</compile_context>

<pallas_src>
import functools

import jax
import jax.numpy as jnp
from jax import lax
from jax.experimental import pallas as pl
from jax.experimental.pallas import tpu as pltpu

_LANE = 128        # lane width (last dim)
_SUBLANE = 8       # sublane width (second-to-last dim)
_MAX_TILE_B = 2048           # rows per grid step (tiny VMEM footprint)
_MIN_B_FOR_TWO_TILES = 256   # v7x: split batch across both TensorCores


def _round_up(n, m):
    return ((n + m - 1) // m) * m


def _mlp_kernel(x_ref, w1_ref, b1_ref, w2t_ref, b2_ref, ot_ref):
    # x: [TB, D] in its native dtype; cast to f32 in-kernel (mirrors x.float()).
    x = x_ref[...].astype(jnp.float32)
    # Layer 1: [TB, D] @ [D, Hp] -> [TB, Hp], f32 MXU accumulation.
    h = jnp.dot(x, w1_ref[...], preferred_element_type=jnp.float32)
    h = jnp.maximum(h + b1_ref[...], 0.0)                      # bias + ReLU
    # Layer 2, transposed output: out^T[a, b] = sum_k w2t[a, k] * h[b, k].
    out_t = lax.dot_general(
        w2t_ref[...], h,
        dimension_numbers=(((1,), (1,)), ((), ())),
        preferred_element_type=jnp.float32)                    # [A_sub, TB]
    ot_ref[...] = (out_t + b2_ref[...]).astype(ot_ref.dtype)   # lane-dense store


def pad_params(w1, b1, w2, b2):
    """Pack params once into TPU-friendly slabs.

    w1: [obs_dim, H], b1: [H], w2: [H, A], b2: [A]  ->
      w1p  [obs_dim, Hp]   (lane-padded only; first dim = full extent is legal)
      b1p  [1, Hp]
      w2tp [A_sub, Hp]     (PyTorch-native [out, in], padded to 8 sublanes)
      b2p  [A_sub, 1]
    Zero padding is exact: padded hidden units see zero weight + zero bias ->
    ReLU(0)=0 -> contribute nothing; padded action rows are sliced off.
    """
    obs_dim, hidden = w1.shape
    n_actions = w2.shape[1]
    h_pad = _round_up(hidden, _LANE)
    a_sub = _round_up(n_actions, _SUBLANE)

    w1p = jnp.zeros((obs_dim, h_pad), jnp.float32).at[:, :hidden].set(w1)
    b1p = jnp.zeros((1, h_pad), jnp.float32).at[0, :hidden].set(b1)
    w2tp = jnp.zeros((a_sub, h_pad), jnp.float32).at[:n_actions, :hidden].set(w2.T)
    b2p = jnp.zeros((a_sub, 1), jnp.float32).at[:n_actions, 0].set(b2)
    return (w1p, b1p, w2tp, b2p), n_actions


@functools.partial(jax.jit, static_argnames=("n_actions",))
def net_forward(x, padded_params, n_actions):
    """x: [B, obs_dim] (any float/int dtype); returns [B, n_actions] float32."""
    w1p, b1p, w2tp, b2p = padded_params
    obs_dim, h_pad = w1p.shape
    a_sub = w2tp.shape[0]
    B, D = x.shape
    assert D == obs_dim

    # Balanced batch tiles.  >=2 tiles once B is non-trivial so the "parallel"
    # batch axis can be sharded across both v7x TensorCores (harmless on
    # v5e/v6e).  Multi-tile case keeps tile_b a multiple of 128 so the
    # transposed output store stays an unmasked full-lane vst.
    num_tiles = max(1, pl.cdiv(B, _MAX_TILE_B))
    if B >= _MIN_B_FOR_TWO_TILES:
        num_tiles = max(num_tiles, 2)
    per_tile = pl.cdiv(B, num_tiles)
    tile_b = _round_up(per_tile, _SUBLANE if num_tiles == 1 else _LANE)
    b_pad = num_tiles * tile_b
    # Ragged last tile: x rows >= B are garbage (undefined reads); the
    # corresponding output columns are dropped by the wrapper slice below.

    out_t = pl.pallas_call(
        _mlp_kernel,
        out_shape=jax.ShapeDtypeStruct((a_sub, b_pad), jnp.float32),
        grid=(num_tiles,),
        in_specs=[
            pl.BlockSpec((tile_b, obs_dim), lambda i: (i, 0)),  # x: tiled over batch
            pl.BlockSpec((obs_dim, h_pad), lambda i: (0, 0)),   # W1: resident
            pl.BlockSpec((1, h_pad), lambda i: (0, 0)),         # b1: resident
            pl.BlockSpec((a_sub, h_pad), lambda i: (0, 0)),     # W2^T: resident
            pl.BlockSpec((a_sub, 1), lambda i: (0, 0)),         # b2: resident
        ],
        out_specs=pl.BlockSpec((a_sub, tile_b), lambda i: (0, i)),
        compiler_params=pltpu.CompilerParams(
            dimension_semantics=("parallel",)),
    )(x, w1p, b1p, w2tp, b2p)

    # Tiny [A_sub, b_pad] -> [B, n_actions]: drops padded action rows and
    # garbage batch columns.
    return out_t[:n_actions, :B].T


def init_params(key, obs_dim, hidden_size, n_actions):
    """Deterministic init mirroring nn.Linear shapes (stored as [in, out])."""
    k1, k2, k3, k4 = jax.random.split(key, 4)
    bound1 = 1.0 / (obs_dim ** 0.5)
    bound2 = 1.0 / (hidden_size ** 0.5)
    w1 = jax.random.uniform(k1, (obs_dim, hidden_size), jnp.float32, -bound1, bound1)
    b1 = jax.random.uniform(k2, (hidden_size,), jnp.float32, -bound1, bound1)
    w2 = jax.random.uniform(k3, (hidden_size, n_actions), jnp.float32, -bound2, bound2)
    b2 = jax.random.uniform(k4, (n_actions,), jnp.float32, -bound2, bound2)
    return w1, b1, w2, b2


if __name__ == "__main__":
    # CartPole: obs_shape=(4,), hidden_size=32, n_actions=2.
    obs_dim, hidden_size, n_actions = 4, 32, 2

    key = jax.random.PRNGKey(0)
    kx1, kx2, kp = jax.random.split(key, 3)
    w1, b1, w2, b2 = init_params(kp, obs_dim, hidden_size, n_actions)
    padded_params, n_act = pad_params(w1, b1, w2, b2)

    def ref_fwd(x):
        return jnp.maximum(x.astype(jnp.float32) @ w1 + b1, 0.0) @ w2 + b2

    # Small batch (single grid step, no padding at all).
    x_small = jax.random.normal(kx1, (8, obs_dim), jnp.float32)
    out_small = net_forward(x_small, padded_params, n_act)
    jax.block_until_ready(out_small)
    assert out_small.shape == (8, n_actions)
    assert jnp.allclose(out_small, ref_fwd(x_small), atol=1e-4, rtol=1e-4)

    # Larger, non-multiple-of-tile batch: exercises the 2-tile "parallel" grid,
    # the ragged last tile, and the transposed-output slice.
    x_big = jax.random.normal(kx2, (1000, obs_dim), jnp.float32)
    out_big = net_forward(x_big, padded_params, n_act)
    jax.block_until_ready(out_big)
    assert out_big.shape == (1000, n_actions)
    assert jnp.allclose(out_big, ref_fwd(x_big), atol=1e-4, rtol=1e-4)

    print("KERNEL_OK")
</pallas_src>

<mosaic_0001>
module attributes {stable_mosaic.version = 11 : i64} {
  func.func @_mlp_kernel(%arg0: i32, %arg1: memref<8x4xf32, #tpu.memory_space<vmem>>, %arg2: memref<4x128xf32, #tpu.memory_space<vmem>>, %arg3: memref<1x128xf32, #tpu.memory_space<vmem>>, %arg4: memref<8x128xf32, #tpu.memory_space<vmem>>, %arg5: memref<8x1xf32, #tpu.memory_space<vmem>>, %arg6: memref<8x8xf32, #tpu.memory_space<vmem>>) attributes {dimension_semantics = [#tpu.dimension_semantics<parallel>], iteration_bounds = array<i64: 1>, scalar_prefetch = 0 : i64, scratch_operands = 0 : i64, tpu.core_type = #tpu.core_type<tc>, window_params = [{transform_indices = @transform_0, window_bounds = array<i64: 8, 4>}, {pipeline_mode = #tpu.pipeline_mode<synchronous>, transform_indices = @transform_1, window_bounds = array<i64: 4, 128>}, {pipeline_mode = #tpu.pipeline_mode<synchronous>, transform_indices = @transform_2, window_bounds = array<i64: 1, 128>}, {pipeline_mode = #tpu.pipeline_mode<synchronous>, transform_indices = @transform_3, window_bounds = array<i64: 8, 128>}, {pipeline_mode = #tpu.pipeline_mode<synchronous>, transform_indices = @transform_4, window_bounds = array<i64: 8, 1>}, {transform_indices = @transform_5, window_bounds = array<i64: 8, 8>}]} {
    %c0 = arith.constant 0 : index
    %c0_0 = arith.constant 0 : index
    %0 = vector.load %arg1[%c0, %c0_0] : memref<8x4xf32, #tpu.memory_space<vmem>>, vector<8x4xf32>
    %c0_1 = arith.constant 0 : index
    %c0_2 = arith.constant 0 : index
    %1 = vector.load %arg2[%c0_1, %c0_2] : memref<4x128xf32, #tpu.memory_space<vmem>>, vector<4x128xf32>
    %cst = arith.constant dense<0.000000e+00> : vector<8x128xf32>
    %2 = tpu.matmul %0, %1, %cst {dimension_numbers = #tpu.dot_dimension_numbers<[1], [0], [0], [1], [0, 0, 1, 1], [], []>} : vector<8x4xf32>, vector<4x128xf32>, vector<8x128xf32> -> vector<8x128xf32>
    %c0_3 = arith.constant 0 : index
    %c0_4 = arith.constant 0 : index
    %3 = vector.load %arg3[%c0_3, %c0_4] : memref<1x128xf32, #tpu.memory_space<vmem>>, vector<1x128xf32>
    %4 = vector.broadcast %3 : vector<1x128xf32> to vector<8x128xf32>
    %5 = arith.addf %2, %4 : vector<8x128xf32>
    %cst_5 = arith.constant 0.000000e+00 : f32
    %6 = vector.broadcast %cst_5 : f32 to vector<8x128xf32>
    %7 = arith.maximumf %5, %6 : vector<8x128xf32>
    %c0_6 = arith.constant 0 : index
    %c0_7 = arith.constant 0 : index
    %8 = vector.load %arg4[%c0_6, %c0_7] : memref<8x128xf32, #tpu.memory_space<vmem>>, vector<8x128xf32>
    %cst_8 = arith.constant dense<0.000000e+00> : vector<8x8xf32>
    %9 = tpu.matmul %8, %7, %cst_8 {dimension_numbers = #tpu.dot_dimension_numbers<[1], [1], [0], [0], [0, 0, 1, 0], [], []>} : vector<8x128xf32>, vector<8x128xf32>, vector<8x8xf32> -> vector<8x8xf32>
    %c0_9 = arith.constant 0 : index
    %c0_10 = arith.constant 0 : index
    %10 = vector.load %arg5[%c0_9, %c0_10] : memref<8x1xf32, #tpu.memory_space<vmem>>, vector<8x1xf32>
    %11 = vector.broadcast %10 : vector<8x1xf32> to vector<8x8xf32>
    %12 = arith.addf %9, %11 : vector<8x8xf32>
    %c0_11 = arith.constant 0 : index
    %c0_12 = arith.constant 0 : index
    %13 = vector.load %arg6[%c0_11, %c0_12] : memref<8x8xf32, #tpu.memory_space<vmem>>, vector<8x8xf32>
    tpu.vector_store %arg6[%c0_11, %c0_12], %12 {strides = array<i32>} : memref<8x8xf32, #tpu.memory_space<vmem>>, vector<8x8xf32>,
    return
  }
  func.func @transform_0(%arg0: i32) -> (i32, i32) {
    %c0_i32 = arith.constant 0 : i32
    %c0_i32_0 = arith.constant 0 : i32
    return %arg0, %c0_i32 : i32, i32
  }
  func.func @transform_1(%arg0: i32) -> (i32, i32) {
    %c0_i32 = arith.constant 0 : i32
    %c0_i32_0 = arith.constant 0 : i32
    %c0_i32_1 = arith.constant 0 : i32
    return %c0_i32, %c0_i32_0 : i32, i32
  }
  func.func @transform_2(%arg0: i32) -> (i32, i32) {
    %c0_i32 = arith.constant 0 : i32
    %c0_i32_0 = arith.constant 0 : i32
    %c0_i32_1 = arith.constant 0 : i32
    return %c0_i32, %c0_i32_0 : i32, i32
  }
  func.func @transform_3(%arg0: i32) -> (i32, i32) {
    %c0_i32 = arith.constant 0 : i32
    %c0_i32_0 = arith.constant 0 : i32
    %c0_i32_1 = arith.constant 0 : i32
    return %c0_i32, %c0_i32_0 : i32, i32
  }
  func.func @transform_4(%arg0: i32) -> (i32, i32) {
    %c0_i32 = arith.constant 0 : i32
    %c0_i32_0 = arith.constant 0 : i32
    %c0_i32_1 = arith.constant 0 : i32
    return %c0_i32, %c0_i32_0 : i32, i32
  }
  func.func @transform_5(%arg0: i32) -> (i32, i32) {
    %c0_i32 = arith.constant 0 : i32
    %c0_i32_0 = arith.constant 0 : i32
    return %c0_i32, %arg0 : i32, i32
  }
}

</mosaic_0001>

<bundles_post_ra>
// kernel: net_forward.1
= control target key start
LH: loop header
LB: loop body
LE: loop exit
PB: predicated region body
PF: predicated region fallthrough
CT: control target
= control target key end

     0   :  { %vm33_vm0 = vcmask 1043456   ;;  %vm29_vm1 = vcmask 31744   ;;  %v212_v0 = vmov 0.0   ;;  %vm213_vm2 = vmmov 0   ;;  %s263_s1 = inlined_call_operand.vmem [shape: f32[4,128], index: 1, kind: input, shape index: {}]   ;;  %s264_s0 = inlined_call_operand.vmem [shape: f32[8,4], index: 0, kind: input, shape index: {}]   ;;  %s265_s4 = inlined_call_operand.vmem [shape: f32[8,1], index: 4, kind: input, shape index: {}]   ;;  %s266_s2 = inlined_call_operand.vmem [shape: f32[1,128], index: 2, kind: input, shape index: {}]   ;;  %s267_s3 = inlined_call_operand.vmem [shape: f32[8,128], index: 3, kind: input, shape index: {}]   ;;  %s268_s5 = inlined_call_operand.vmem [shape: f32[8,8], index: 5, kind: output, shape index: {}]  }
   0x1   :  { %198 = vmatprep.subr.mxu0 %v212_v0  ;;  %v21_v1 = vld [vmem:[%s263_s1] sm:$0xf]  ;;  %200 = vmatprep.mubr.msk.f32.mxu0 %vm213_vm2, %v212_v0  ;;  %v214_v3 = vmov 0   ;;  %vm185_vm3 = vcmask 64512  }
   0x2   :  { %v20_v2 = vld [vmem:[%s264_s0] sm:$0xff]  ;;  %199 = vmatpush3.msk.msra.mxu0 %vm33_vm0, %v21_v1  ;;  %203 = vmatprep.subr.mxu1 %v212_v0 }
   0x3   :  { %201 = vmatmul.mubr.msk.f32.vlgmr.msra.gmra.mrb[0].mxu0 %vm29_vm1, %v20_v2  ;;  %205 = vmatprep.mubr.msk.f32.mxu1 %vm213_vm2, %v212_v0  ;;  %v109_v4 = vld [vmem:[%s265_s4] sm:$0xff] }
   0x4   :  { %211 = vset.pattern.permute.xlu0 %v214_v3  ;;  %v191_v5 = vld [vmem:[%s266_s2] ss:$0 sm:$0xff] }
   0x5   :  { %112 = vperm.xlu0 %211, %v109_v4   ;;  %v108_v10 = vld [vmem:[%s267_s3] sm:$0xff] }
  0x84   :  { %v113_v11 = vpop.permute.xlu0 %112 }
  0xd6   :  { %v103_v6 = vpop.f32.mrb[0].mxu0 }
  0xd7   :  { %v104_v7 = vadd.f32 %v191_v5, %v103_v6  ;;  %v202_v8 = vpop.f32.mrb[1].mxu0 }
  0xd9   :  { %v107_v9 = vmax.f32 %v104_v7, 0.0 }
  0xdb   :  { %204 = vmatpush3.xpose.msra.mxu1 %v107_v9 }
  0xde   :  { %206 = vmatmul.mubr.f32.vlgmr.msra.gmra.mrb[0].mxu1 %v108_v10 }
 0x1b1   :  { %v181_v12 = vpop.f32.mrb[0].mxu1 }
 0x1b2   :  { %v182_v13 = vadd.f32 %v181_v12, %v113_v11  ;;  %v207_v14 = vpop.f32.mrb[1].mxu1 }
 0x1b4   :  { %186 = vst.msk [vmem:[%s268_s5] sm:$0xff] %vm185_vm3, %v182_v13 }

</bundles_post_ra>
